<compile_context>
chip_gen: v5e
topology: v5e:2x2
jax: 0.10.0
libtpu: 0.0.40
codegen_flags: <defaults>
</compile_context>

<pallas_src>
import jax
import jax.numpy as jnp
from jax.experimental import pallas as pl
from jax.experimental.pallas import tpu as pltpu


IN_F = 93
OUT_F = 9


def _mlp_kernel(x_ref,
                w1_ref, b1_ref,
                w2_ref, b2_ref,
                w3_ref, b3_ref,
                w4_ref, b4_ref,
                o_ref):
    # One TB-row tile of x per grid step; weights/biases are VMEM-resident.
    # x arrives as f32 (streamed straight from HBM); cast to bf16 in-register
    # for the MXU (VPU pack, essentially free). Accumulation stays f32.
    x = x_ref[...].astype(jnp.bfloat16)              # bf16 [TB, 93]

    h = jnp.dot(x, w1_ref[...], preferred_element_type=jnp.float32) + b1_ref[...]
    h = jnp.maximum(h, 0.0).astype(jnp.bfloat16)     # [TB, 64]

    h = jnp.dot(h, w2_ref[...], preferred_element_type=jnp.float32) + b2_ref[...]
    h = jnp.maximum(h, 0.0).astype(jnp.bfloat16)     # [TB, 32]

    h = jnp.dot(h, w3_ref[...], preferred_element_type=jnp.float32) + b3_ref[...]
    h = jnp.maximum(h, 0.0).astype(jnp.bfloat16)     # [TB, 16]

    out = jnp.dot(h, w4_ref[...], preferred_element_type=jnp.float32) + b4_ref[...]
    o_ref[...] = out.astype(o_ref.dtype)             # f32 [TB, 9]


def _round_up(n, m):
    return ((n + m - 1) // m) * m


def _choose_tile(batch, tb_max):
    """Pick a batch tile: large enough to amortize per-grid-step overhead,
    but always >=2 grid steps for non-trivial batches (v7x megacore), and
    balanced so the tail tile never wastes ~a whole tile of DMA/compute."""
    if batch <= 16:
        return _round_up(batch, 8)          # single tiny tile
    n_tiles = max(pl.cdiv(batch, tb_max), 2)
    tb = _round_up(pl.cdiv(batch, n_tiles), 16)
    return min(tb, _round_up(batch, 8))


def prepare_params(params):
    """One-time conversion outside the hot path: weights -> bf16, biases f32."""
    out = []
    for name in ("l1", "l2", "l3", "l4"):
        w, b = params[name]
        out.append(w.astype(jnp.bfloat16))
        out.append(b.astype(jnp.float32))
    return tuple(out)


def net_forward(x, prepared, *, tb_max=4096):
    """x: [B, 93] float32. prepared: tuple from prepare_params()."""
    B, F = x.shape
    assert F == IN_F, f"expected {IN_F} input features, got {F}"
    w1b, b1, w2b, b2, w3b, b3, w4b, b4 = prepared

    tb = _choose_tile(B, tb_max)
    grid = (pl.cdiv(B, tb),)                 # non-dividing last block is fine:
                                             # tail OOB writes are dropped.

    # Resident operand: same block every grid step -> stays in VMEM.
    def resident(shape):
        return pl.BlockSpec(shape, lambda i: (0,) * len(shape))

    out = pl.pallas_call(
        _mlp_kernel,
        out_shape=jax.ShapeDtypeStruct((B, OUT_F), jnp.float32),
        grid=grid,
        in_specs=[
            pl.BlockSpec((tb, IN_F), lambda i: (i, 0)),   # streamed f32 x tile
            resident(w1b.shape), resident(b1.shape),
            resident(w2b.shape), resident(b2.shape),
            resident(w3b.shape), resident(b3.shape),
            resident(w4b.shape), resident(b4.shape),
        ],
        out_specs=pl.BlockSpec((tb, OUT_F), lambda i: (i, 0)),
        compiler_params=pltpu.CompilerParams(
            dimension_semantics=("parallel",),            # megacore on v7x
        ),
    )(x, w1b, b1, w2b, b2, w3b, b3, w4b, b4)

    return out


def init_params(key):
    """Deterministic init mimicking torch.nn.Linear default (U[-1/sqrt(in), 1/sqrt(in)])."""
    dims = [(93, 64), (64, 32), (32, 16), (16, 9)]
    names = ["l1", "l2", "l3", "l4"]
    params = {}
    for name, (fan_in, fan_out) in zip(names, dims):
        key, kw, kb = jax.random.split(key, 3)
        bound = 1.0 / jnp.sqrt(jnp.float32(fan_in))
        w = jax.random.uniform(kw, (fan_in, fan_out), jnp.float32, -bound, bound)
        b = jax.random.uniform(kb, (1, fan_out), jnp.float32, -bound, bound)
        params[name] = (w, b)
    return params


def _reference_f32(x, params):
    h = x
    for name in ["l1", "l2", "l3"]:
        w, b = params[name]
        h = jnp.maximum(h @ w + b, 0.0)
    w, b = params["l4"]
    return h @ w + b


if __name__ == "__main__":
    key = jax.random.PRNGKey(0)
    kx, kx2, kp = jax.random.split(key, 3)
    params = init_params(kp)
    prepared = prepare_params(params)        # bf16 weights, converted once

    # Small batch (single tile, tb == B).
    B = 8
    x = jax.random.normal(kx, (B, IN_F), jnp.float32)
    out = jax.block_until_ready(net_forward(x, prepared))
    ref = _reference_f32(x, params)
    assert out.shape == (B, OUT_F)
    assert jnp.allclose(out, ref, atol=5e-2, rtol=5e-2), (
        f"max err {jnp.max(jnp.abs(out - ref))}")

    # Larger batch exercising multi-step grid + non-dividing last block
    # (B=1000, tb=512 -> 2 grid steps, tail tile has 488 valid rows).
    B2 = 1000
    x2 = jax.random.normal(kx2, (B2, IN_F), jnp.float32)
    out2 = jax.block_until_ready(net_forward(x2, prepared))
    ref2 = _reference_f32(x2, params)
    assert out2.shape == (B2, OUT_F)
    assert jnp.allclose(out2, ref2, atol=5e-2, rtol=5e-2), (
        f"max err {jnp.max(jnp.abs(out2 - ref2))}")

    print("KERNEL_OK")
</pallas_src>

<mosaic_0001>
module attributes {stable_mosaic.version = 11 : i64} {
  func.func @_mlp_kernel(%arg0: i32, %arg1: memref<8x93xf32, #tpu.memory_space<vmem>>, %arg2: memref<93x64xbf16, #tpu.memory_space<vmem>>, %arg3: memref<1x64xf32, #tpu.memory_space<vmem>>, %arg4: memref<64x32xbf16, #tpu.memory_space<vmem>>, %arg5: memref<1x32xf32, #tpu.memory_space<vmem>>, %arg6: memref<32x16xbf16, #tpu.memory_space<vmem>>, %arg7: memref<1x16xf32, #tpu.memory_space<vmem>>, %arg8: memref<16x9xbf16, #tpu.memory_space<vmem>>, %arg9: memref<1x9xf32, #tpu.memory_space<vmem>>, %arg10: memref<8x9xf32, #tpu.memory_space<vmem>>) attributes {dimension_semantics = [#tpu.dimension_semantics<parallel>], iteration_bounds = array<i64: 1>, scalar_prefetch = 0 : i64, scratch_operands = 0 : i64, tpu.core_type = #tpu.core_type<tc>, window_params = [{transform_indices = @transform_0, window_bounds = array<i64: 8, 93>}, {pipeline_mode = #tpu.pipeline_mode<synchronous>, transform_indices = @transform_1, window_bounds = array<i64: 93, 64>}, {pipeline_mode = #tpu.pipeline_mode<synchronous>, transform_indices = @transform_2, window_bounds = array<i64: 1, 64>}, {pipeline_mode = #tpu.pipeline_mode<synchronous>, transform_indices = @transform_3, window_bounds = array<i64: 64, 32>}, {pipeline_mode = #tpu.pipeline_mode<synchronous>, transform_indices = @transform_4, window_bounds = array<i64: 1, 32>}, {pipeline_mode = #tpu.pipeline_mode<synchronous>, transform_indices = @transform_5, window_bounds = array<i64: 32, 16>}, {pipeline_mode = #tpu.pipeline_mode<synchronous>, transform_indices = @transform_6, window_bounds = array<i64: 1, 16>}, {pipeline_mode = #tpu.pipeline_mode<synchronous>, transform_indices = @transform_7, window_bounds = array<i64: 16, 9>}, {pipeline_mode = #tpu.pipeline_mode<synchronous>, transform_indices = @transform_8, window_bounds = array<i64: 1, 9>}, {transform_indices = @transform_9, window_bounds = array<i64: 8, 9>}]} {
    %c0 = arith.constant 0 : index
    %c0_0 = arith.constant 0 : index
    %0 = vector.load %arg1[%c0, %c0_0] : memref<8x93xf32, #tpu.memory_space<vmem>>, vector<8x93xf32>
    %1 = arith.truncf %0 : vector<8x93xf32> to vector<8x93xbf16>
    %c0_1 = arith.constant 0 : index
    %c0_2 = arith.constant 0 : index
    %2 = vector.load %arg2[%c0_1, %c0_2] : memref<93x64xbf16, #tpu.memory_space<vmem>>, vector<93x64xbf16>
    %cst = arith.constant dense<0.000000e+00> : vector<8x64xf32>
    %3 = tpu.matmul %1, %2, %cst {dimension_numbers = #tpu.dot_dimension_numbers<[1], [0], [0], [1], [0, 0, 1, 1], [], []>} : vector<8x93xbf16>, vector<93x64xbf16>, vector<8x64xf32> -> vector<8x64xf32>
    %c0_3 = arith.constant 0 : index
    %c0_4 = arith.constant 0 : index
    %4 = vector.load %arg3[%c0_3, %c0_4] : memref<1x64xf32, #tpu.memory_space<vmem>>, vector<1x64xf32>
    %5 = vector.broadcast %4 : vector<1x64xf32> to vector<8x64xf32>
    %6 = arith.addf %3, %5 : vector<8x64xf32>
    %cst_5 = arith.constant 0.000000e+00 : f32
    %7 = vector.broadcast %cst_5 : f32 to vector<8x64xf32>
    %8 = arith.maximumf %6, %7 : vector<8x64xf32>
    %9 = arith.truncf %8 : vector<8x64xf32> to vector<8x64xbf16>
    %c0_6 = arith.constant 0 : index
    %c0_7 = arith.constant 0 : index
    %10 = vector.load %arg4[%c0_6, %c0_7] : memref<64x32xbf16, #tpu.memory_space<vmem>>, vector<64x32xbf16>
    %cst_8 = arith.constant dense<0.000000e+00> : vector<8x32xf32>
    %11 = tpu.matmul %9, %10, %cst_8 {dimension_numbers = #tpu.dot_dimension_numbers<[1], [0], [0], [1], [0, 0, 1, 1], [], []>} : vector<8x64xbf16>, vector<64x32xbf16>, vector<8x32xf32> -> vector<8x32xf32>
    %c0_9 = arith.constant 0 : index
    %c0_10 = arith.constant 0 : index
    %12 = vector.load %arg5[%c0_9, %c0_10] : memref<1x32xf32, #tpu.memory_space<vmem>>, vector<1x32xf32>
    %13 = vector.broadcast %12 : vector<1x32xf32> to vector<8x32xf32>
    %14 = arith.addf %11, %13 : vector<8x32xf32>
    %cst_11 = arith.constant 0.000000e+00 : f32
    %15 = vector.broadcast %cst_11 : f32 to vector<8x32xf32>
    %16 = arith.maximumf %14, %15 : vector<8x32xf32>
    %17 = arith.truncf %16 : vector<8x32xf32> to vector<8x32xbf16>
    %c0_12 = arith.constant 0 : index
    %c0_13 = arith.constant 0 : index
    %18 = vector.load %arg6[%c0_12, %c0_13] : memref<32x16xbf16, #tpu.memory_space<vmem>>, vector<32x16xbf16>
    %cst_14 = arith.constant dense<0.000000e+00> : vector<8x16xf32>
    %19 = tpu.matmul %17, %18, %cst_14 {dimension_numbers = #tpu.dot_dimension_numbers<[1], [0], [0], [1], [0, 0, 1, 1], [], []>} : vector<8x32xbf16>, vector<32x16xbf16>, vector<8x16xf32> -> vector<8x16xf32>
    %c0_15 = arith.constant 0 : index
    %c0_16 = arith.constant 0 : index
    %20 = vector.load %arg7[%c0_15, %c0_16] : memref<1x16xf32, #tpu.memory_space<vmem>>, vector<1x16xf32>
    %21 = vector.broadcast %20 : vector<1x16xf32> to vector<8x16xf32>
    %22 = arith.addf %19, %21 : vector<8x16xf32>
    %cst_17 = arith.constant 0.000000e+00 : f32
    %23 = vector.broadcast %cst_17 : f32 to vector<8x16xf32>
    %24 = arith.maximumf %22, %23 : vector<8x16xf32>
    %25 = arith.truncf %24 : vector<8x16xf32> to vector<8x16xbf16>
    %c0_18 = arith.constant 0 : index
    %c0_19 = arith.constant 0 : index
    %26 = vector.load %arg8[%c0_18, %c0_19] : memref<16x9xbf16, #tpu.memory_space<vmem>>, vector<16x9xbf16>
    %cst_20 = arith.constant dense<0.000000e+00> : vector<8x9xf32>
    %27 = tpu.matmul %25, %26, %cst_20 {dimension_numbers = #tpu.dot_dimension_numbers<[1], [0], [0], [1], [0, 0, 1, 1], [], []>} : vector<8x16xbf16>, vector<16x9xbf16>, vector<8x9xf32> -> vector<8x9xf32>
    %c0_21 = arith.constant 0 : index
    %c0_22 = arith.constant 0 : index
    %28 = vector.load %arg9[%c0_21, %c0_22] : memref<1x9xf32, #tpu.memory_space<vmem>>, vector<1x9xf32>
    %29 = vector.broadcast %28 : vector<1x9xf32> to vector<8x9xf32>
    %30 = arith.addf %27, %29 : vector<8x9xf32>
    %c0_23 = arith.constant 0 : index
    %c0_24 = arith.constant 0 : index
    %31 = vector.load %arg10[%c0_23, %c0_24] : memref<8x9xf32, #tpu.memory_space<vmem>>, vector<8x9xf32>
    tpu.vector_store %arg10[%c0_23, %c0_24], %30 {strides = array<i32>} : memref<8x9xf32, #tpu.memory_space<vmem>>, vector<8x9xf32>,
    return
  }
  func.func @transform_0(%arg0: i32) -> (i32, i32) {
    %c0_i32 = arith.constant 0 : i32
    %c0_i32_0 = arith.constant 0 : i32
    return %arg0, %c0_i32 : i32, i32
  }
  func.func @transform_1(%arg0: i32) -> (i32, i32) {
    %c0_i32 = arith.constant 0 : i32
    %c0_i32_0 = arith.constant 0 : i32
    %c0_i32_1 = arith.constant 0 : i32
    return %c0_i32, %c0_i32_0 : i32, i32
  }
  func.func @transform_2(%arg0: i32) -> (i32, i32) {
    %c0_i32 = arith.constant 0 : i32
    %c0_i32_0 = arith.constant 0 : i32
    %c0_i32_1 = arith.constant 0 : i32
    return %c0_i32, %c0_i32_0 : i32, i32
  }
  func.func @transform_3(%arg0: i32) -> (i32, i32) {
    %c0_i32 = arith.constant 0 : i32
    %c0_i32_0 = arith.constant 0 : i32
    %c0_i32_1 = arith.constant 0 : i32
    return %c0_i32, %c0_i32_0 : i32, i32
  }
  func.func @transform_4(%arg0: i32) -> (i32, i32) {
    %c0_i32 = arith.constant 0 : i32
    %c0_i32_0 = arith.constant 0 : i32
    %c0_i32_1 = arith.constant 0 : i32
    return %c0_i32, %c0_i32_0 : i32, i32
  }
  func.func @transform_5(%arg0: i32) -> (i32, i32) {
    %c0_i32 = arith.constant 0 : i32
    %c0_i32_0 = arith.constant 0 : i32
    %c0_i32_1 = arith.constant 0 : i32
    return %c0_i32, %c0_i32_0 : i32, i32
  }
  func.func @transform_6(%arg0: i32) -> (i32, i32) {
    %c0_i32 = arith.constant 0 : i32
    %c0_i32_0 = arith.constant 0 : i32
    %c0_i32_1 = arith.constant 0 : i32
    return %c0_i32, %c0_i32_0 : i32, i32
  }
  func.func @transform_7(%arg0: i32) -> (i32, i32) {
    %c0_i32 = arith.constant 0 : i32
    %c0_i32_0 = arith.constant 0 : i32
    %c0_i32_1 = arith.constant 0 : i32
    return %c0_i32, %c0_i32_0 : i32, i32
  }
  func.func @transform_8(%arg0: i32) -> (i32, i32) {
    %c0_i32 = arith.constant 0 : i32
    %c0_i32_0 = arith.constant 0 : i32
    %c0_i32_1 = arith.constant 0 : i32
    return %c0_i32, %c0_i32_0 : i32, i32
  }
  func.func @transform_9(%arg0: i32) -> (i32, i32) {
    %c0_i32 = arith.constant 0 : i32
    %c0_i32_0 = arith.constant 0 : i32
    return %arg0, %c0_i32 : i32, i32
  }
}

</mosaic_0001>

<bundles_post_ra>
// kernel: tpu_custom_call.1
= control target key start
LH: loop header
LB: loop body
LE: loop exit
PB: predicated region body
PF: predicated region fallthrough
CT: control target
= control target key end

     0   :  { %vm91_vm0 = vcmask 1045504   ;;  %vm92_vm1 = vcmask 1046528   ;;  %v355_v3 = vmov 65535   ;;  %s467_s0 = inlined_call_operand.vmem [shape: f32[8,93], index: 0, kind: input, shape index: {}]   ;;  %s468_s1 = inlined_call_operand.vmem [shape: bf16[93,64], index: 1, kind: input, shape index: {}]   ;;  %s469_s2 = inlined_call_operand.vmem [shape: f32[1,64], index: 2, kind: input, shape index: {}]   ;;  %s470_s3 = inlined_call_operand.vmem [shape: bf16[64,32], index: 3, kind: input, shape index: {}]   ;;  %s471_s4 = inlined_call_operand.vmem [shape: f32[1,32], index: 4, kind: input, shape index: {}]   ;;  %s472_s5 = inlined_call_operand.vmem [shape: bf16[32,16], index: 5, kind: input, shape index: {}]   ;;  %s473_s6 = inlined_call_operand.vmem [shape: f32[1,16], index: 6, kind: input, shape index: {}]   ;;  %s474_s7 = inlined_call_operand.vmem [shape: bf16[16,9], index: 7, kind: input, shape index: {}]   ;;  %s475_s8 = inlined_call_operand.vmem [shape: f32[1,9], index: 8, kind: input, shape index: {}]   ;;  %s476_s9 = inlined_call_operand.hbm [shape: f32[8,9], index: 9, kind: output, shape index: {}]  }
   0x1   :  { %v276_v0 = vld [vmem:[%s468_s1 + $0x28] sm:$0xf]  ;;  %v315_v1 = vld [vmem:[%s468_s1 + $0x28] sm:$0x70]  ;;  %v93_v4 = vsel %vm91_vm0, 4294967295, %v355_v3  ;;  %v319_v6 = vld [vmem:[%s470_s3 + $0x18] sm:$0xff] }
   0x2   :  { %v277_v2 = vor.u32 %v315_v1, %v276_v0  ;;  %v94_v5 = vsel %vm92_vm1, %v93_v4, 0  ;;  %157 = vmatpush.bf16.msra.mxu1 %v319_v6  ;;  %v318_v8 = vld [vmem:[%s470_s3 + $0x10] sm:$0xff] }
   0x4   :  { %v96_v7 = vand.u32 %v277_v2, %v94_v5 }
   0x5   :  { %14 = vsyncpa [#allocation3], 0  ;;  %v314_v9 = vld [vmem:[%s468_s1 + $0x20] sm:$0xff]  ;;  %v313_v10 = vld [vmem:[%s468_s1 + $0x18] sm:$0xff]  ;;  %vm87_vm2 = vcmask 760832   ;;  %vm149_vm3 = vcmask 523264  }
   0x6   :  { %100 = vmatpush.bf16.msra.mxu0 %v96_v7  ;;  %158 = vmatpush.bf16.msra.mxu1 %v318_v8  ;;  %v312_v11 = vld [vmem:[%s468_s1 + $0x10] sm:$0xff]  ;;  %v311_v12 = vld [vmem:[%s468_s1 + $0x8] sm:$0xff]  ;;  %v310_v13 = vld [vmem:[%s468_s1] sm:$0xff]  ;;  %vm188_vm4 = vcmask 261120   ;;  %vm219_vm5 = vcmask 130048   ;;  %s356_s20 = smov [#allocation2]  }
   0x7   :  { %v34_v14 = vld [vmem:[%s467_s0] sm:$0xff]  ;;  %v317_v16 = vld [vmem:[%s470_s3 + $0x8] sm:$0xff]  ;;  %s243_s21 = sshll.u32 %s356_s20, 4  ;;  %s245_s23 = sshll.u32 %s476_s9, 4  ;;  %vm236_vm6 = vcmask 72704   ;;  %s244_s21 = int_to_ptr.vmem [resolvable:$true] %s243_s21  ;;  %s246_s23 = int_to_ptr.hbm [resolvable:$true] %s245_s23 }
   0x8   :  { %v35_v15 = vpack.c.bf16 %v34_v14, %v34_v14  ;;  %v316_v17 = vld [vmem:[%s470_s3] sm:$0xff]  ;;  %v321_v24 = vld [vmem:[%s472_s5 + $0x8] sm:$0xff] }
   0x9   :  { %v325_v18 = vld [vmem:[%s469_s2] ss:$0 sm:$0xff]  ;;  %198 = vmatpush.bf16.msra.mxu2 %v321_v24 }
   0xa   :  { %101 = vmatpush.bf16.msra.mxu0 %v314_v9  ;;  %159 = vmatpush.bf16.msra.mxu1 %v317_v16  ;;  %v320_v25 = vld [vmem:[%s472_s5] sm:$0xff] }
   0xb   :  { %v326_v26 = vld [vmem:[%s471_s4] ss:$0 sm:$0xff] }
   0xc   :  { %v322_v32 = vld [vmem:[%s474_s7] sm:$0xff] }
   0xd   :  { %199 = vmatpush.bf16.msra.mxu2 %v320_v25  ;;  %230 = vmatpush.bf16.msra.mxu3 %v322_v32  ;;  %v327_v33 = vld [vmem:[%s473_s6] ss:$0 sm:$0xff] }
   0xe   :  { %102 = vmatpush.bf16.msra.mxu0 %v313_v10  ;;  %160 = vmatpush.bf16.msra.mxu1 %v316_v17  ;;  %v328_v39 = vld [vmem:[%s475_s8] ss:$0 sm:$0xff] }
  0x12   :  { %103 = vmatpush.bf16.msra.mxu0 %v312_v11 }
  0x16   :  { %104 = vmatpush.bf16.msra.mxu0 %v311_v12 }
  0x1a   :  { %105 = vmatpush.bf16.msra.mxu0 %v310_v13 }
  0x1d   :  { %278 = vmatmul.msk.bf16.vlgmr.msra.gmra.mxu0 %vm87_vm2, %v35_v15 }
  0x9a   :  { %v107_v19 = vpop.f32.mrf.mxu0 }
  0x9b   :  { %v108_v20 = vadd.f32 %v325_v18, %v107_v19 }
  0x9d   :  { %v111_v21 = vmax.f32 %v108_v20, 0.0 }
  0x9f   :  { %v112_v22 = vpack.c.bf16 %v111_v21, %v111_v21 }
  0xa1   :  { %295 = vmatmul.msk.bf16.vlgmr.msra.gmra.mxu1 %vm149_vm3, %v112_v22 }
  0xa2   :  { %v109_v23 = vpop.f32.mrf.mxu0 }
 0x11e   :  { %v162_v27 = vpop.f32.mrf.mxu1 }
 0x11f   :  { %v163_v28 = vadd.f32 %v326_v26, %v162_v27 }
 0x121   :  { %v166_v29 = vmax.f32 %v163_v28, 0.0 }
 0x123   :  { %v167_v30 = vpack.c.bf16 %v166_v29, %v166_v29 }
 0x125   :  { %304 = vmatmul.msk.bf16.vlgmr.msra.gmra.mxu2 %vm188_vm4, %v167_v30 }
 0x126   :  { %v164_v31 = vpop.f32.mrf.mxu1 }
 0x1a8   :  { %v201_v34 = vpop.f32.mrf.mxu2 }
 0x1a9   :  { %v202_v35 = vadd.f32 %v327_v33, %v201_v34 }
 0x1ab   :  { %v205_v36 = vmax.f32 %v202_v35, 0.0 }
 0x1ad   :  { %v206_v37 = vpack.c.bf16 %v205_v36, %v205_v36 }
 0x1af   :  { %309 = vmatmul.msk.bf16.vlgmr.msra.gmra.mxu3 %vm219_vm5, %v206_v37 }
 0x1b0   :  { %v203_v38 = vpop.f32.mrf.mxu2 }
 0x232   :  { %v232_v40 = vpop.f32.mrf.mxu3 }
 0x233   :  { %v233_v41 = vadd.f32 %v328_v39, %v232_v40 }
 0x235   :  { %237 = vst.msk [vmem:[#allocation2] sm:$0xff] %vm236_vm6, %v233_v41 }
 0x236   :  { %248 = dma.vmem_to_hbm [thread:$0]  %s244_s21, 128, %s246_s23, [#allocation3]  }
 0x23a   :  { %v234_v42 = vpop.f32.mrf.mxu3 }
 0x23b   :  { %353 = dma.done.wait [#allocation3], 128  }
 0x23c   :  { %354 = vsyncadd [#allocation3], 4294967168 }
 0x23d   :  { %253 = vsyncpa [#allocation3], 1 }

</bundles_post_ra>
